<compile_context>
chip_gen: v7x
topology: tpu7x:2x2x1
jax: 0.10.0
libtpu: 0.0.40
codegen_flags: <defaults>
</compile_context>

<pallas_src>
import jax
import jax.numpy as jnp
from jax.experimental import pallas as pl
from jax.experimental.pallas import tpu as pltpu


# ----------------------------------------------------------------------------
# UV generation (glue, plain JAX) — mirrors PatchRaySampler.gen_patch_pixel_uv
# ----------------------------------------------------------------------------
def _mk_uv(h_pixel, w_pixel):
    # torch: stack(meshgrid(h, w, 'ij')).flip(0).reshape(2,-1).T  -> columns [x, y]
    H, W = jnp.meshgrid(h_pixel, w_pixel, indexing="ij")
    return jnp.stack([W.reshape(-1), H.reshape(-1)], axis=-1)  # (n, 2)


def gen_patch_pixel_uv_head(resolution, h_crop, w_crop, width):
    ar = jnp.arange(resolution, dtype=jnp.float32) * (1.0 / resolution) * width
    return _mk_uv(ar + h_crop, ar + w_crop)  # (resolution**2, 2)


def gen_patch_pixel_uv_body(resolution, h_crop, w_crop, width):
    res = resolution // 2
    ar = jnp.arange(res, dtype=jnp.float32) * (1.0 / res) * width

    # i == 1
    uv1 = _mk_uv(ar + h_crop + 2.0 * width, ar + w_crop)
    # i == 2 (clamp h >= 1 -> 1 - 0.5/res)
    h2 = ar + h_crop + 3.0 * width
    h2 = jnp.where(h2 >= 1.0, 1.0 - 0.5 / res, h2)
    uv2 = _mk_uv(h2, ar + w_crop)
    # i == 3
    h3 = ar + h_crop + width
    uv3 = _mk_uv(h3, ar + w_crop - width)
    # i == 4
    uv4 = _mk_uv(h3, ar + w_crop)
    # i == 5: flipped h, shifted w; overwrites uv3 rows where triangle mask == 0
    uv5 = _mk_uv(h3[::-1], ar + w_crop + width)
    i_idx = jnp.arange(res)[:, None]
    j_idx = jnp.arange(res)[None, :]
    tri_zero = ((i_idx + j_idx) < res).reshape(-1)
    uv3 = jnp.where(tri_zero[:, None], uv5, uv3)

    return jnp.concatenate([uv1, uv2, uv3, uv4], axis=0)  # (4*res**2, 2)


# ----------------------------------------------------------------------------
# Pallas kernel
# ----------------------------------------------------------------------------
_NCOEF = 16            # 9 used coefficients + pad (keeps the lane width tidy)
_TARGET_OUT_BYTES = 3 * 1024 * 1024   # target HBM-write volume per grid step


def _make_ray_dirs_kernel(bn, tm, chunk, out_dtype):
    """Kernel over a (BN batches) x (TM rays) tile, chunked along lanes."""
    n_groups = bn // 8
    n_chunks = tm // chunk

    def kernel(uv_ref, coef_ref, dirs_ref):
        # uv_ref:   (2, TM)       row 0 = x_cam, row 1 = y_cam (shared by batch)
        # coef_ref: (BN, 16)      per-batch folded K = R @ L (9 coefficients)
        # dirs_ref: (3, BN, TM)   channels-major normalized directions
        def lane_body(c, carry):
            col = pl.multiple_of(c * chunk, chunk)
            x = uv_ref[0:1, pl.ds(col, chunk)]   # (1, chunk) -> bcast over sublanes
            y = uv_ref[1:2, pl.ds(col, chunk)]
            for g in range(n_groups):            # static: sublane offsets constant
                r0 = g * 8
                k = coef_ref[r0:r0 + 8, :]        # (8, 16); (8,1) cols bcast lanes
                dx = k[:, 0:1] * x + k[:, 1:2] * y + k[:, 2:3]
                dy = k[:, 3:4] * x + k[:, 4:5] * y + k[:, 5:6]
                dz = k[:, 6:7] * x + k[:, 7:8] * y + k[:, 8:9]
                # F.normalize: d / max(|d|, 1e-12) == d * rsqrt(max(|d|^2, 1e-24))
                inv = jax.lax.rsqrt(jnp.maximum(dx * dx + dy * dy + dz * dz, 1e-24))
                dirs_ref[0, r0:r0 + 8, pl.ds(col, chunk)] = (dx * inv).astype(out_dtype)
                dirs_ref[1, r0:r0 + 8, pl.ds(col, chunk)] = (dy * inv).astype(out_dtype)
                dirs_ref[2, r0:r0 + 8, pl.ds(col, chunk)] = (dz * inv).astype(out_dtype)
            return carry

        jax.lax.fori_loop(0, n_chunks, lane_body, 0)

    return kernel


def _round_up(v, m):
    return ((v + m - 1) // m) * m


def patch_ray_sampler_forward(cam2world_matrix, intrinsics, resolution,
                              channels_last=True, out_dtype=jnp.float32):
    """PatchRaySampler.forward.

    Returns (ray_origins, ray_dirs):
      channels_last=True  -> both (N, M, 3)      (PyTorch convention)
      channels_last=False -> both (3, N, M)      (channels-major, no relayout)
    out_dtype: jnp.float32 (exact semantics) or jnp.bfloat16 (halves HBM writes).
    """
    N = cam2world_matrix.shape[0]
    h_crop_uv, w_crop_uv, width_uv = 0.02539, 0.373, 0.25

    uv_head = gen_patch_pixel_uv_head(resolution, h_crop_uv, w_crop_uv, width_uv)
    uv_body = gen_patch_pixel_uv_body(resolution, h_crop_uv, w_crop_uv, width_uv)
    uv = jnp.concatenate([uv_head, uv_body], axis=0).astype(jnp.float32)  # (M, 2)
    M = uv.shape[0]  # = 2 * resolution**2

    # --- tile selection: batch on sublanes (x8), rays on lanes (x128) ---------
    N_pad = _round_up(max(N, 1), 8)
    # largest multiple of 8 <= 64 that divides N_pad (always >= 8)
    BN = max(b for b in range(8, min(N_pad, 64) + 1, 8) if N_pad % b == 0)

    # lane tile: aim for ~3 MiB of (3, BN, TM) f32 output per step
    tm_target = (_TARGET_OUT_BYTES // (12 * BN) // 128) * 128
    tm_target = max(1024, min(8192, tm_target))
    M_pad = _round_up(M, 128)
    if M_pad <= tm_target:
        TM = M_pad
    else:
        TM = tm_target
        M_pad = _round_up(M_pad, TM)

    grid_m = M_pad // TM
    grid_n = N_pad // BN
    # v7x has 2 TensorCores: avoid a degenerate (1, 1) grid when M allows a split.
    if grid_m * grid_n == 1 and M_pad % 256 == 0:
        TM = M_pad // 2
        grid_m = 2

    CHUNK = next(c for c in (512, 256, 128) if TM % c == 0)

    # --- inputs ---------------------------------------------------------------
    uv_t = jnp.pad(uv.T, ((0, 0), (0, M_pad - M)))  # (2, M_pad)

    cam2world_matrix = cam2world_matrix.astype(jnp.float32)
    intrinsics = intrinsics.astype(jnp.float32)
    fx = intrinsics[:, 0, 0]
    fy = intrinsics[:, 1, 1]
    cx = intrinsics[:, 0, 2]
    cy = intrinsics[:, 1, 2]
    sk = intrinsics[:, 0, 1]

    # Fold intrinsics lift into the rotation:  d = R @ [x_lift, y_lift, 1]
    #                                            = (R @ L) @ [x, y, 1] = K @ [x, y, 1]
    ax = 1.0 / fx
    bxy = -sk / (fx * fy)
    cxc = (-cx + cy * sk / fy) / fx
    ay = 1.0 / fy
    cyc = -cy / fy
    zeros = jnp.zeros_like(fx)
    ones = jnp.ones_like(fx)
    L = jnp.stack(
        [jnp.stack([ax, bxy, cxc], axis=-1),
         jnp.stack([zeros, ay, cyc], axis=-1),
         jnp.stack([zeros, zeros, ones], axis=-1)],
        axis=1,
    )  # (N, 3, 3)
    R = cam2world_matrix[:, :3, :3]
    K = jnp.einsum("nij,njk->nik", R, L)            # (N, 3, 3)
    coef = K.reshape(N, 9)                          # [K00 K01 K02 K10 ... K22]
    coef = jnp.pad(coef, ((0, N_pad - N), (0, _NCOEF - 9)))  # (N_pad, 16)

    kernel = _make_ray_dirs_kernel(BN, TM, CHUNK, out_dtype)

    dirs_cm = pl.pallas_call(
        kernel,
        out_shape=jax.ShapeDtypeStruct((3, N_pad, M_pad), out_dtype),
        grid_spec=pltpu.PrefetchScalarGridSpec(
            num_scalar_prefetch=0,
            # M blocks outer, N blocks inner: the uv block index (0, mb) is
            # constant across the inner loop -> its DMA is skipped per step.
            grid=(grid_m, grid_n),
            in_specs=[
                pl.BlockSpec((2, TM), lambda mb, nb: (0, mb)),
                pl.BlockSpec((BN, _NCOEF), lambda mb, nb: (nb, 0)),
            ],
            out_specs=pl.BlockSpec((3, BN, TM), lambda mb, nb: (0, nb, mb)),
        ),
        compiler_params=pltpu.CompilerParams(
            dimension_semantics=("parallel", "parallel")
        ),
    )(uv_t, coef)

    cam_locs_world = cam2world_matrix[:, :3, 3]      # (N, 3)

    if channels_last:
        # PyTorch convention (N, M, 3).  NOTE: this relayout re-reads/re-writes
        # the whole output with a minor dim of 3; consumers that can take the
        # channels-major buffer should call with channels_last=False instead.
        ray_dirs = jnp.transpose(dirs_cm[:, :N, :M], (1, 2, 0))
        ray_origins = jnp.broadcast_to(cam_locs_world[:, None, :], (N, M, 3))
    else:
        ray_dirs = dirs_cm[:, :N, :M]                              # (3, N, M)
        ray_origins = jnp.broadcast_to(cam_locs_world.T[:, :, None], (3, N, M))

    return ray_origins, ray_dirs


# ----------------------------------------------------------------------------
# Pure-JAX reference (correctness check) — mirrors the PyTorch forward
# ----------------------------------------------------------------------------
def _reference_forward(cam2world_matrix, intrinsics, resolution):
    N = cam2world_matrix.shape[0]
    h_crop_uv, w_crop_uv, width_uv = 0.02539, 0.373, 0.25
    uv_head = gen_patch_pixel_uv_head(resolution, h_crop_uv, w_crop_uv, width_uv)
    uv_body = gen_patch_pixel_uv_body(resolution, h_crop_uv, w_crop_uv, width_uv)
    uv = jnp.concatenate([uv_head, uv_body], axis=0)
    M = uv.shape[0]
    uv = jnp.broadcast_to(uv[None], (N, M, 2))

    cam_locs_world = cam2world_matrix[:, :3, 3]
    fx = intrinsics[:, 0, 0][:, None]
    fy = intrinsics[:, 1, 1][:, None]
    cx = intrinsics[:, 0, 2][:, None]
    cy = intrinsics[:, 1, 2][:, None]
    sk = intrinsics[:, 0, 1][:, None]

    x_cam = uv[:, :, 0]
    y_cam = uv[:, :, 1]
    z_cam = jnp.ones((N, M), dtype=jnp.float32)
    x_lift = (x_cam - cx + cy * sk / fy - sk * y_cam / fy) / fx * z_cam
    y_lift = (y_cam - cy) / fy * z_cam
    cam_rel = jnp.stack([x_lift, y_lift, z_cam, jnp.ones_like(z_cam)], axis=-1)
    world_rel = jnp.einsum("nij,nmj->nmi", cam2world_matrix, cam_rel)[:, :, :3]
    ray_dirs = world_rel - cam_locs_world[:, None, :]
    norm = jnp.linalg.norm(ray_dirs, axis=2, keepdims=True)
    ray_dirs = ray_dirs / jnp.maximum(norm, 1e-12)
    ray_origins = jnp.broadcast_to(cam_locs_world[:, None, :], (N, M, 3))
    return ray_origins, ray_dirs


if __name__ == "__main__":
    key = jax.random.PRNGKey(0)
    k1, k2, k3 = jax.random.split(key, 3)

    N = 2
    resolution = 16  # must be even (body mode uses resolution // 2)

    # deterministic cam2world: random top 3x4, homogeneous bottom row
    top = jax.random.normal(k1, (N, 3, 4), dtype=jnp.float32) * 0.5
    bottom = jnp.tile(jnp.array([[0.0, 0.0, 0.0, 1.0]], jnp.float32)[None], (N, 1, 1))
    cam2world = jnp.concatenate([top, bottom], axis=1)  # (N, 4, 4)

    # deterministic intrinsics: fx, fy ~ 4, small skew, principal point ~ 0.5
    f = 4.0 + 0.1 * jax.random.normal(k2, (N, 2), dtype=jnp.float32)
    pp = 0.5 + 0.05 * jax.random.normal(k3, (N, 2), dtype=jnp.float32)
    sk = jnp.full((N,), 0.01, dtype=jnp.float32)
    intrinsics = jnp.zeros((N, 3, 3), dtype=jnp.float32)
    intrinsics = intrinsics.at[:, 0, 0].set(f[:, 0])
    intrinsics = intrinsics.at[:, 1, 1].set(f[:, 1])
    intrinsics = intrinsics.at[:, 0, 2].set(pp[:, 0])
    intrinsics = intrinsics.at[:, 1, 2].set(pp[:, 1])
    intrinsics = intrinsics.at[:, 0, 1].set(sk)
    intrinsics = intrinsics.at[:, 2, 2].set(1.0)

    origins, dirs = patch_ray_sampler_forward(cam2world, intrinsics, resolution)
    origins = jax.block_until_ready(origins)
    dirs = jax.block_until_ready(dirs)

    ref_origins, ref_dirs = _reference_forward(cam2world, intrinsics, resolution)

    M_total = 2 * resolution**2
    assert origins.shape == (N, M_total, 3), origins.shape
    assert dirs.shape == (N, M_total, 3), dirs.shape
    assert jnp.allclose(origins, ref_origins, atol=1e-5, rtol=1e-5)
    assert jnp.allclose(dirs, ref_dirs, atol=1e-4, rtol=1e-4)

    # channels-major path (no post-kernel relayout) must match the same reference
    origins_cm, dirs_cm = patch_ray_sampler_forward(
        cam2world, intrinsics, resolution, channels_last=False)
    dirs_cm = jax.block_until_ready(dirs_cm)
    assert dirs_cm.shape == (3, N, M_total), dirs_cm.shape
    assert jnp.allclose(dirs_cm, jnp.transpose(ref_dirs, (2, 0, 1)),
                        atol=1e-4, rtol=1e-4)
    assert jnp.allclose(origins_cm, jnp.transpose(ref_origins, (2, 0, 1)),
                        atol=1e-5, rtol=1e-5)

    print("KERNEL_OK")
</pallas_src>

<mosaic_0001>
module attributes {stable_mosaic.version = 11 : i64} {
  func.func @kernel(%arg0: i32, %arg1: i32, %arg2: memref<2x256xf32, #tpu.memory_space<vmem>>, %arg3: memref<8x16xf32, #tpu.memory_space<vmem>>, %arg4: memref<3x8x256xf32, #tpu.memory_space<vmem>>) attributes {dimension_semantics = [#tpu.dimension_semantics<parallel>, #tpu.dimension_semantics<parallel>], iteration_bounds = array<i64: 2, 1>, scalar_prefetch = 0 : i64, scratch_operands = 0 : i64, tpu.core_type = #tpu.core_type<tc>, window_params = [{transform_indices = @transform_0, window_bounds = array<i64: 2, 256>}, {transform_indices = @transform_1, window_bounds = array<i64: 8, 16>}, {transform_indices = @transform_2, window_bounds = array<i64: 3, 8, 256>}]} {
    %c0_i32 = arith.constant 0 : i32
    %c256_i32 = arith.constant 256 : i32
    %0 = arith.muli %c0_i32, %c256_i32 : i32
    %1 = tpu.assume_multiple %0, 256 : i32
    %c0 = arith.constant 0 : index
    %2 = arith.index_cast %1 : i32 to index
    %3 = vector.load %arg2[%c0, %2] : memref<2x256xf32, #tpu.memory_space<vmem>>, vector<1x256xf32>
    %c1 = arith.constant 1 : index
    %4 = arith.index_cast %1 : i32 to index
    %5 = vector.load %arg2[%c1, %4] : memref<2x256xf32, #tpu.memory_space<vmem>>, vector<1x256xf32>
    %c0_0 = arith.constant 0 : index
    %c0_1 = arith.constant 0 : index
    %6 = vector.load %arg3[%c0_0, %c0_1] : memref<8x16xf32, #tpu.memory_space<vmem>>, vector<8x16xf32>
    %7 = vector.extract_strided_slice %6 {offsets = [0, 0], sizes = [8, 1], strides = [1, 1]} : vector<8x16xf32> to vector<8x1xf32>
    %8 = vector.broadcast %7 : vector<8x1xf32> to vector<8x256xf32>
    %9 = vector.broadcast %3 : vector<1x256xf32> to vector<8x256xf32>
    %10 = arith.mulf %8, %9 : vector<8x256xf32>
    %11 = vector.extract_strided_slice %6 {offsets = [0, 1], sizes = [8, 1], strides = [1, 1]} : vector<8x16xf32> to vector<8x1xf32>
    %12 = vector.broadcast %11 : vector<8x1xf32> to vector<8x256xf32>
    %13 = vector.broadcast %5 : vector<1x256xf32> to vector<8x256xf32>
    %14 = arith.mulf %12, %13 : vector<8x256xf32>
    %15 = arith.addf %10, %14 : vector<8x256xf32>
    %16 = vector.extract_strided_slice %6 {offsets = [0, 2], sizes = [8, 1], strides = [1, 1]} : vector<8x16xf32> to vector<8x1xf32>
    %17 = vector.broadcast %16 : vector<8x1xf32> to vector<8x256xf32>
    %18 = arith.addf %15, %17 : vector<8x256xf32>
    %19 = vector.extract_strided_slice %6 {offsets = [0, 3], sizes = [8, 1], strides = [1, 1]} : vector<8x16xf32> to vector<8x1xf32>
    %20 = vector.broadcast %19 : vector<8x1xf32> to vector<8x256xf32>
    %21 = vector.broadcast %3 : vector<1x256xf32> to vector<8x256xf32>
    %22 = arith.mulf %20, %21 : vector<8x256xf32>
    %23 = vector.extract_strided_slice %6 {offsets = [0, 4], sizes = [8, 1], strides = [1, 1]} : vector<8x16xf32> to vector<8x1xf32>
    %24 = vector.broadcast %23 : vector<8x1xf32> to vector<8x256xf32>
    %25 = vector.broadcast %5 : vector<1x256xf32> to vector<8x256xf32>
    %26 = arith.mulf %24, %25 : vector<8x256xf32>
    %27 = arith.addf %22, %26 : vector<8x256xf32>
    %28 = vector.extract_strided_slice %6 {offsets = [0, 5], sizes = [8, 1], strides = [1, 1]} : vector<8x16xf32> to vector<8x1xf32>
    %29 = vector.broadcast %28 : vector<8x1xf32> to vector<8x256xf32>
    %30 = arith.addf %27, %29 : vector<8x256xf32>
    %31 = vector.extract_strided_slice %6 {offsets = [0, 6], sizes = [8, 1], strides = [1, 1]} : vector<8x16xf32> to vector<8x1xf32>
    %32 = vector.broadcast %31 : vector<8x1xf32> to vector<8x256xf32>
    %33 = vector.broadcast %3 : vector<1x256xf32> to vector<8x256xf32>
    %34 = arith.mulf %32, %33 : vector<8x256xf32>
    %35 = vector.extract_strided_slice %6 {offsets = [0, 7], sizes = [8, 1], strides = [1, 1]} : vector<8x16xf32> to vector<8x1xf32>
    %36 = vector.broadcast %35 : vector<8x1xf32> to vector<8x256xf32>
    %37 = vector.broadcast %5 : vector<1x256xf32> to vector<8x256xf32>
    %38 = arith.mulf %36, %37 : vector<8x256xf32>
    %39 = arith.addf %34, %38 : vector<8x256xf32>
    %40 = vector.extract_strided_slice %6 {offsets = [0, 8], sizes = [8, 1], strides = [1, 1]} : vector<8x16xf32> to vector<8x1xf32>
    %41 = vector.broadcast %40 : vector<8x1xf32> to vector<8x256xf32>
    %42 = arith.addf %39, %41 : vector<8x256xf32>
    %43 = arith.mulf %18, %18 : vector<8x256xf32>
    %44 = arith.mulf %30, %30 : vector<8x256xf32>
    %45 = arith.addf %43, %44 : vector<8x256xf32>
    %46 = arith.mulf %42, %42 : vector<8x256xf32>
    %47 = arith.addf %45, %46 : vector<8x256xf32>
    %cst = arith.constant 1.000000e-24 : f32
    %48 = vector.broadcast %cst : f32 to vector<8x256xf32>
    %49 = arith.maximumf %47, %48 : vector<8x256xf32>
    %50 = math.rsqrt %49 : vector<8x256xf32>
    %51 = arith.mulf %18, %50 : vector<8x256xf32>
    %c0_2 = arith.constant 0 : index
    %c0_3 = arith.constant 0 : index
    %52 = arith.index_cast %1 : i32 to index
    %53 = vector.load %arg4[%c0_2, %c0_3, %52] : memref<3x8x256xf32, #tpu.memory_space<vmem>>, vector<1x8x256xf32>
    %54 = vector.shape_cast %53 : vector<1x8x256xf32> to vector<8x256xf32>
    %55 = vector.shape_cast %51 : vector<8x256xf32> to vector<1x8x256xf32>
    tpu.vector_store %arg4[%c0_2, %c0_3, %52], %55 {strides = array<i32>} : memref<3x8x256xf32, #tpu.memory_space<vmem>>, vector<1x8x256xf32>,
    %56 = arith.mulf %30, %50 : vector<8x256xf32>
    %c1_4 = arith.constant 1 : index
    %c0_5 = arith.constant 0 : index
    %57 = arith.index_cast %1 : i32 to index
    %58 = vector.load %arg4[%c1_4, %c0_5, %57] : memref<3x8x256xf32, #tpu.memory_space<vmem>>, vector<1x8x256xf32>
    %59 = vector.shape_cast %58 : vector<1x8x256xf32> to vector<8x256xf32>
    %60 = vector.shape_cast %56 : vector<8x256xf32> to vector<1x8x256xf32>
    tpu.vector_store %arg4[%c1_4, %c0_5, %57], %60 {strides = array<i32>} : memref<3x8x256xf32, #tpu.memory_space<vmem>>, vector<1x8x256xf32>,
    %61 = arith.mulf %42, %50 : vector<8x256xf32>
    %c2 = arith.constant 2 : index
    %c0_6 = arith.constant 0 : index
    %62 = arith.index_cast %1 : i32 to index
    %63 = vector.load %arg4[%c2, %c0_6, %62] : memref<3x8x256xf32, #tpu.memory_space<vmem>>, vector<1x8x256xf32>
    %64 = vector.shape_cast %63 : vector<1x8x256xf32> to vector<8x256xf32>
    %65 = vector.shape_cast %61 : vector<8x256xf32> to vector<1x8x256xf32>
    tpu.vector_store %arg4[%c2, %c0_6, %62], %65 {strides = array<i32>} : memref<3x8x256xf32, #tpu.memory_space<vmem>>, vector<1x8x256xf32>,
    %c1_i32 = arith.constant 1 : i32
    return
  }
  func.func @transform_0(%arg0: i32, %arg1: i32) -> (i32, i32) {
    %c0_i32 = arith.constant 0 : i32
    %c0_i32_0 = arith.constant 0 : i32
    return %c0_i32, %arg0 : i32, i32
  }
  func.func @transform_1(%arg0: i32, %arg1: i32) -> (i32, i32) {
    %c0_i32 = arith.constant 0 : i32
    %c0_i32_0 = arith.constant 0 : i32
    return %arg1, %c0_i32 : i32, i32
  }
  func.func @transform_2(%arg0: i32, %arg1: i32) -> (i32, i32, i32) {
    %c0_i32 = arith.constant 0 : i32
    %c0_i32_0 = arith.constant 0 : i32
    return %c0_i32, %arg1, %arg0 : i32, i32, i32
  }
}

</mosaic_0001>

<bundles_post_ra>
// kernel: tpu_custom_call.1
= control target key start
LH: loop header
LB: loop body
LE: loop exit
PB: predicated region body
PF: predicated region fallthrough
CT: control target
= control target key end

     0   :  { %7 = vsyncpa [#allocation3], 0  ;;  %s949_s0 = inlined_call_operand.hbm [shape: f32[2,512], index: 0, kind: input, shape index: {}]   ;;  %s950_s1 = inlined_call_operand.hbm [shape: f32[8,16], index: 1, kind: input, shape index: {}]   ;;  %s951_s2 = inlined_call_operand.hbm [shape: f32[3,8,512], index: 2, kind: output, shape index: {}]  }
   0x1   :  { %9 = vsyncpa [#allocation3 + $0x1], 0 }
   0x2   :  { %10 = vsyncpa [#allocation6], 0 }
   0x3   :  { %11 = vsyncpa [#allocation4], 0 }
   0x4   :  { %13 = vsyncpa [#allocation4 + $0x1], 0  ;;  %s726_s9 = smov 0   ;;  %s728_s10 = smov 0  }
   0x5   :  { %s730_s11 = smov 0   ;;  %s732_s12 = smov 0  }
   0x6   :  { %s734_s13 = smov 0   ;;  %s736_s14 = smov 0  }
   0x7 LB: > { %s429_s15 = sadd.s32 4294967295, %s694_s14   ;;  %s430_s16 = sadd.s32 4294967294, %s694_s14   ;;  %s694_s14 = sphi %s736_s14, %s19_s14   ;;  %s690_s13 = sphi %s734_s13, %s976_s13   ;;  %s686_s12 = sphi %s732_s12, %s975_s12   ;;  %s682_s11 = sphi %s730_s11, %s974_s11   ;;  %s678_s10 = sphi %s728_s10, %s973_s10   ;;  %s674_s9 = sphi %s726_s9, %s972_s9  }
   0x8   : > { %p51_p0 = scmp.ne.s32.totalorder %s678_s10, %s674_s9  ;;  %p760_p1 = scmp.eq.s32.totalorder %s429_s15, 0 }
   0x9   : > { %p764_p2 = scmp.eq.s32.totalorder %s429_s15, 1  ;;  %p109_p3 = scmp.eq.s32.totalorder %s430_s16, 1 }
   0xa   : > { %s956_s17 = scalar_select %p760_p1, 1, 0 }
   0xb   : > { %s957_s18 = scalar_select %p764_p2, 1, 0 }
   0xc   : > { %p770_p4 = por %p760_p1, %p51_p0  ;;  %p431_p5 = scmp.ge.s32.totalorder %s694_s14, 1 }
   0xd   : > { %p775_p6 = por %p109_p3, %p51_p0  ;;  %p116_p7 = scmp.lt.s32.totalorder %s694_s14, 3 }
   0xe   : > { %s958_s19 = scalar_select %p770_p4, 1, 0 }
   0xf   : > { %s959_s20 = scalar_select %p775_p6, 1, 0 }
  0x10   : > { %p780_p8 = pnand %p431_p5, %p116_p7  ;;  %s696_s22 = smov [#allocation5]  }
  0x11   : > { %s131_s23 = sshll.u32 %s696_s22, 4  ;;  %s31_s25 = sadd.s32 1, %s690_s13  ;;  %s132_s23 = int_to_ptr.vmem [resolvable:$true] %s131_s23 }
  0x12   : > { %s960_s21 = scalar_select %p780_p8, 1, 0 }
  0x13   : > { %p460_p10 = pneg %p780_p8  ;;  %s38_s26 = sadd.s32 1, %s682_s11 }
  0x14   : > { %p795_p12 = scmp.ge.s32.totalorder %s31_s25, 2  ;;  %s550_s30 = scalar_lea.hbm %s950_s1, 128 }
  0x15   : > { %p789_p11 = pnand %p460_p10, %p760_p1  ;;  %p551_p13 = scmp.ne.s32.totalorder %s950_s1, %s550_s30 }
  0x16   : > { %s962_s27 = scalar_select %p795_p12, 1, 0 }
  0x17   : > { %p552_p0 = pneg %p789_p11  ;;  %p557_p7 = scmp.lt.u32.totalorder %s550_s30, %s950_s1 }
  0x19   : > { %p553_p3 = pnand %p552_p0, %p551_p13 }
  0x1b   : > { %p554_p5 = pneg %p553_p3 }
  0x1d   : > { %p559_p10 = pnand %p557_p7, %p554_p5 }
  0x1f   : > { %562 = shalt.err (!%p559_p10)
}
  0x20   : > { %s563_s7 = scalar_lea.vmem %s132_s23, 128  ;;  %p571_p4 = scmp.lt.s32.totalorder %s132_s23, %s132_s23 }
  0x21   : > { %p564_p9 = scmp.ne.s32.totalorder %s132_s23, %s563_s7  ;;  %p572_p8 = scmp.lt.s32.totalorder %s563_s7, %s563_s7 }
  0x23   : > { %p566_p6 = pnand %p564_p9, %p552_p0  ;;  %p573_p2 = por %p572_p8, %p571_p4 }
  0x25   : > { %p567_p1 = pneg %p566_p6 }
  0x27   : > { %p574_p12 = pnand %p573_p2, %p567_p1 }
  0x29   : > { %577 = shalt.err (!%p574_p12)
}
  0x2a   : > { %463 = dma.hbm_to_vmem [thread:$0]  (!%p789_p11), %s950_s1, 128, %s132_s23, [#allocation6]  }
  0x2b   : > { %p963_p4 = scmp.ne.s32.totalorder %s962_s27, 0  ;;  %p45_p1 = scmp.ne.s32.totalorder %s682_s11, %s678_s10 }
  0x2c   : > { %p46_p2 = scmp.eq.s32.totalorder %s694_s14, 0  ;;  %p473_p6 = scmp.lt.s32.totalorder %s694_s14, 2 }
  0x2d   : > { %s978_s25 = smov (%p963_p4, %s31_s25), 0  ;;  %p964_p12 = scmp.ne.s32.totalorder %s957_s18, 0 }
  0x2e   : > { %s35_s16 = ssub.s32 %s690_s13, %s978_s25  ;;  %p47_p9 = por %p46_p2, %p45_p1 }
  0x2f   : > { %p36_p8 = scmp.eq.s32.totalorder %s35_s16, 0  ;;  %p827_p13 = por %p964_p12, %p45_p1 }
  0x30   : > { %s142_s24 = sand.u32 1, %s682_s11   ;;  %s449_s27 = sshll.u32 %s690_s13, 6 }
  0x31   : > { %s835_s28 = scalar_select %p36_p8, %s682_s11, %s38_s26  }
  0x32   : > { %s434_s23 = sshll.u32 %s142_s24, 2  ;;  %s841_s3 = scalar_lea.hbm %s949_s0, %s449_s27 }
  0x33   : > { %s146_s18 = scalar_lea.vmem [#allocation2], %s434_s23  ;;  %p845_p11 = pnand %p473_p6, %p47_p9 }
  0x34   : > { %s154_s4 = sshll.u32 %s146_s18, 4  ;;  %s143_s26 = scalar_lea.sflag [#allocation3], %s142_s24  ;;  %s843_s4 = int_to_ptr.vmem [resolvable:$true] %s154_s4 }
  0x35   : > { %s578_s6 = scalar_lea.hbm %s841_s3, 64  ;;  %p580_p3 = pneg %p845_p11 }
  0x36   : > { %p579_p0 = scmp.ne.s32.totalorder %s841_s3, %s578_s6  ;;  %s583_s15 = scalar_lea.hbm %s949_s0, 128 }
  0x37   : > { %p584_p10 = scmp.lt.u32.totalorder %s841_s3, %s949_s0  ;;  %p585_p4 = scmp.lt.u32.totalorder %s583_s15, %s578_s6 }
  0x38   : > { %p581_p5 = pnand %p580_p3, %p579_p0  ;;  %p587_p2 = scmp.lt.u32.totalorder %s578_s6, %s841_s3 }
  0x39   : > { %p586_p1 = por %p585_p4, %p584_p10 }
  0x3a   : > { %p582_p7 = pneg %p581_p5 }
  0x3b   : > { %p588_p6 = por %p587_p2, %p586_p1 }
  0x3d   : > { %p589_p8 = pnand %p588_p6, %p582_p7 }
  0x3f   : > { %592 = shalt.err (!%p589_p8)
}
  0x40   : > { %s593_s24 = scalar_lea.vmem %s843_s4, 64  ;;  %s697_s27 = smov [#allocation2]  }
  0x41   : > { %p594_p9 = scmp.ne.s32.totalorder %s843_s4, %s593_s24  ;;  %s598_s29 = sshll.u32 %s697_s27, 4  ;;  %s599_s29 = int_to_ptr.vmem [resolvable:$false] %s598_s29 }
  0x42   : > { %s600_s30 = scalar_lea.vmem %s599_s29, 128  ;;  %p601_p5 = scmp.lt.s32.totalorder %s843_s4, %s599_s29 }
  0x43   : > { %p596_p12 = pnand %p594_p9, %p580_p3  ;;  %p602_p10 = scmp.lt.s32.totalorder %s600_s30, %s593_s24 }
  0x45   : > { %p597_p0 = pneg %p596_p12  ;;  %p603_p4 = por %p602_p10, %p601_p5 }
  0x47   : > { %p604_p1 = pnand %p603_p4, %p597_p0 }
  0x49   : > { %607 = shalt.err (!%p604_p1)
}
  0x4a   : > { %467 = dma.hbm_to_vmem [thread:$0]  (!%p845_p11), %s841_s3, 64, %s843_s4, %s143_s26  }
  0x4b   : > { %p967_p7 = scmp.ne.s32.totalorder %s960_s21, 0 }
  0x4c   : > { %s877_s18 = sand.u32 (!%p967_p7), 1, %s678_s10   ;;  %p968_p3 = scmp.ne.s32.totalorder (!%p967_p7), %s958_s19, 0 }
  0x4d   : > { %163 = sbr.rel (%p967_p7) target bundleno = 279 (0x117), region = 28  ;;  %s438_s6 = sshll.u32 (!%p967_p7), %s877_s18, 2 }
  0x4e   : > { %s166_s7 = scalar_lea.sflag (!%p967_p7), [#allocation3], %s877_s18  ;;  %s881_s8 = scalar_lea.vmem (!%p967_p7), [#allocation2], %s438_s6 }
  0x54   : > { %661 = dma.done.wait (%p968_p3), %s166_s7, 64  }
  0x55   : > { %663 = vsyncadd (%p968_p3), %s166_s7, 4294967232  ;;  %p969_p11 = scmp.ne.s32.totalorder %s956_s17, 0 }
  0x57   : > { %665 = dma.done.wait (%p969_p11), [#allocation6], 128  }
  0x58   : > { %667 = vsyncadd (%p969_p11), [#allocation6], 4294967168  ;;  %v698_v0 = vmov 3   ;;  %v699_v1 = vmov 0   ;;  %v199_v2 = vld [vmem:[#allocation5] sm:$0xff]  ;;  %v700_v3 = vmov 4   ;;  %v206_v10 = vlaneseq }
  0x59   : > { %539 = vset.pattern.permute.xlu1 %v698_v0  ;;  %537 = vset.pattern.permute.xlu0 %v699_v1  ;;  %v701_v4 = vmov 1   ;;  %v702_v5 = vmov 6   ;;  %v703_v6 = vmov 7   ;;  %v704_v7 = vmov 2   ;;  %s451_s17 = smul.u32 48, %s877_s18  ;;  %s450_s3 = sshll.u32 %s686_s12, 8 }
  0x5a   : > { %244 = vperm.xlu1 %539, %v199_v2   ;;  %202 = vperm.xlu0 %537, %v199_v2   ;;  %v705_v8 = vmov 8   ;;  %v706_v9 = vmov 5   ;;  %v207_v13 = vshrl.u32 %v206_v10, 7  ;;  %v196_v18 = vld [vmem:[%s881_s8] ss:$2 sm:$0x3]  ;;  %s900_s26 = scalar_lea.hbm %s951_s2, %s450_s3 }
  0x5b   : > { %v440_v19 = vld [vmem:[%s881_s8 + $0x1] ss:$2 sm:$0x3]  ;;  %s193_s19 = scalar_lea.vmem [#allocation7], %s451_s17  ;;  %s316_s12 = scalar_lea.sflag [#allocation4], %s877_s18 }
  0x5c   : > { %v208_v16 = vsub.s32 0, %v207_v13  ;;  %v212_v17 = vsub.s32 1, %v207_v13  ;;  %s331_s21 = sshll.u32 %s193_s19, 4  ;;  %s707_s16 = smov [#allocation7]   ;;  %s895_s21 = int_to_ptr.vmem [resolvable:$true] %s331_s21 }
  0x5d   : > { %s608_s15 = scalar_lea.vmem %s895_s21, 768  ;;  %s612_s23 = sshll.u32 %s707_s16, 4  ;;  %s613_s23 = int_to_ptr.vmem [resolvable:$false] %s612_s23 }
  0x5e   : > { %540 = vset.pattern.permute.xlu1 %v700_v3  ;;  %538 = vset.pattern.permute.xlu0 %v701_v4  ;;  %v209_v20 = vrot.slane %v196_v18, %v208_v16  ;;  %v213_v21 = vrot.slane %v196_v18, %v212_v17  ;;  %v226_v22 = vrot.slane %v440_v19, %v208_v16  ;;  %p609_p2 = scmp.ne.s32.totalorder %s895_s21, %s608_s15  ;;  %s614_s24 = scalar_lea.vmem %s613_s23, 1536 }
  0x5f   : > { %250 = vperm.xlu1 %540, %v199_v2   ;;  %219 = vperm.xlu0 %538, %v199_v2   ;;  %v230_v23 = vrot.slane %v440_v19, %v212_v17  ;;  %p615_p9 = scmp.lt.s32.totalorder %s895_s21, %s613_s23  ;;  %p616_p12 = scmp.lt.s32.totalorder %s614_s24, %s608_s15 }
  0x60   : > { %p610_p6 = pnand %p609_p2, %p827_p13 }
  0x61   : > { %p617_p0 = por %p616_p12, %p615_p9 }
  0x62   : > { %p611_p8 = pneg %p610_p6 }
  0x63   : > { %541 = vset.pattern.permute.xlu1 %v702_v5  ;;  %542 = vset.pattern.permute.xlu0 %v703_v6 }
  0x64   : > { %264 = vperm.xlu1 %541, %v199_v2   ;;  %270 = vperm.xlu0 %542, %v199_v2   ;;  %p618_p5 = pnand %p617_p0, %p611_p8 }
  0x68   : > { %543 = vset.pattern.permute.xlu1 %v704_v7  ;;  %545 = vset.pattern.permute.xlu0 %v705_v8 }
  0x69   : > { %238 = vperm.xlu1 %543, %v199_v2   ;;  %278 = vperm.xlu0 %545, %v199_v2  }
  0x6d   : > { %544 = vset.pattern.permute.xlu1 %v706_v9 }
  0x6e   : > { %258 = vperm.xlu1 %544, %v199_v2  }
  0xd9   : > { %v245_v11 = vpop.permute.xlu1 %244  ;;  %v203_v12 = vpop.permute.xlu0 %202 }
  0xda   : > { %v216_v26 = vmul.f32 %v209_v20, %v203_v12  ;;  %v217_v27 = vmul.f32 %v213_v21, %v203_v12  ;;  %v247_v37 = vmul.f32 %v245_v11, %v209_v20  ;;  %v248_v38 = vmul.f32 %v245_v11, %v213_v21 }
  0xde   : > { %v251_v14 = vpop.permute.xlu1 %250  ;;  %v220_v15 = vpop.permute.xlu0 %219 }
  0xdf   : > { %v233_v28 = vmul.f32 %v226_v22, %v220_v15  ;;  %v234_v29 = vmul.f32 %v230_v23, %v220_v15  ;;  %v253_v34 = vmul.f32 %v251_v14, %v226_v22  ;;  %v254_v35 = vmul.f32 %v251_v14, %v230_v23 }
  0xe1   : > { %v235_v39 = vadd.f32 %v233_v28, %v216_v26  ;;  %v236_v40 = vadd.f32 %v234_v29, %v217_v27  ;;  %v255_v46 = vadd.f32 %v253_v34, %v247_v37  ;;  %v256_v47 = vadd.f32 %v254_v35, %v248_v38 }
  0xe3   : > { %v265_v24 = vpop.permute.xlu1 %264  ;;  %v271_v25 = vpop.permute.xlu0 %270 }
  0xe4   : > { %v267_v30 = vmul.f32 %v265_v24, %v209_v20  ;;  %v268_v31 = vmul.f32 %v265_v24, %v213_v21  ;;  %v273_v32 = vmul.f32 %v271_v25, %v226_v22  ;;  %v274_v33 = vmul.f32 %v271_v25, %v230_v23 }
  0xe6   : > { %v275_v41 = vadd.f32 %v273_v32, %v267_v30  ;;  %v276_v42 = vadd.f32 %v274_v33, %v268_v31 }
  0xe8   : > { %v239_v36 = vpop.permute.xlu1 %238  ;;  %v279_v43 = vpop.permute.xlu0 %278 }
  0xe9   : > { %v241_v44 = vadd.f32 %v239_v36, %v235_v39  ;;  %v242_v45 = vadd.f32 %v239_v36, %v236_v40  ;;  %v281_v49 = vadd.f32 %v279_v43, %v275_v41  ;;  %v282_v50 = vadd.f32 %v279_v43, %v276_v42 }
  0xeb   : > { %v283_v53 = vmul.f32 %v241_v44, %v241_v44  ;;  %v284_v54 = vmul.f32 %v242_v45, %v242_v45  ;;  %v289_v57 = vmul.f32 %v281_v49, %v281_v49  ;;  %v290_v58 = vmul.f32 %v282_v50, %v282_v50 }
  0xed   : > { %v259_v48 = vpop.permute.xlu1 %258 }
  0xee   : > { %v261_v51 = vadd.f32 %v259_v48, %v255_v46  ;;  %v262_v52 = vadd.f32 %v259_v48, %v256_v47 }
  0xf0   : > { %v285_v55 = vmul.f32 %v261_v51, %v261_v51  ;;  %v286_v56 = vmul.f32 %v262_v52, %v262_v52 }
  0xf2   : > { %v287_v59 = vadd.f32 %v285_v55, %v283_v53  ;;  %v288_v60 = vadd.f32 %v286_v56, %v284_v54 }
  0xf4   : > { %v291_v61 = vadd.f32 %v289_v57, %v287_v59  ;;  %v292_v62 = vadd.f32 %v290_v58, %v288_v60 }
  0xf6   : > { %v293_v63 = vmax.f32 %v291_v61, 1e-24  ;;  %v294_v0 = vmax.f32 %v292_v62, 1e-24 }
  0xf8   : > { %546 = vrsqrt.f32 %v293_v63 }
  0xf9   : > { %548 = vrsqrt.f32 %v294_v0 }
 0x102   : > { %v547_v1 = vpop.eup %546 }
 0x103   : > { %v549_v2 = vpop.eup %548  ;;  %v297_v3 = vmul.f32 %v547_v1, %v241_v44  ;;  %v301_v4 = vmul.f32 %v547_v1, %v261_v51  ;;  %v308_v5 = vmul.f32 %v547_v1, %v281_v49 }
 0x104   : > { %v298_v6 = vmul.f32 %v549_v2, %v242_v45  ;;  %v302_v7 = vmul.f32 %v549_v2, %v262_v52  ;;  %v309_v8 = vmul.f32 %v549_v2, %v282_v50 }
 0x105   : > { %299 = vst [vmem:[%s193_s19] sm:$0xff] %v297_v3  ;;  %441 = vst [vmem:[%s193_s19 + $0x10] sm:$0xff] %v301_v4 }
 0x106   : > { %443 = vst [vmem:[%s193_s19 + $0x20] sm:$0xff] %v308_v5  ;;  %300 = vst [vmem:[%s193_s19 + $0x8] sm:$0xff] %v298_v6 }
 0x107   : > { %442 = vst [vmem:[%s193_s19 + $0x18] sm:$0xff] %v302_v7  ;;  %444 = vst [vmem:[%s193_s19 + $0x28] sm:$0xff] %v309_v8 }
 0x108   : > { %621 = shalt.err (!%p618_p5)
}
 0x109   : > { %s622_s27 = scalar_lea.hbm %s900_s26, 768  ;;  %s626_s6 = scalar_lea.hbm %s951_s2, 1536 }
 0x10a   : > { %p623_p10 = scmp.ne.s32.totalorder %s900_s26, %s622_s27  ;;  %p627_p7 = scmp.lt.u32.totalorder %s900_s26, %s951_s2 }
 0x10b   : > { %p628_p3 = scmp.lt.u32.totalorder %s626_s6, %s622_s27  ;;  %p630_p2 = scmp.lt.u32.totalorder %s622_s27, %s900_s26 }
 0x10c   : > { %p624_p4 = pnand %p623_p10, %p827_p13 }
 0x10d   : > { %p629_p11 = por %p628_p3, %p627_p7 }
 0x10e   : > { %p625_p1 = pneg %p624_p4 }
 0x10f   : > { %p631_p6 = por %p630_p2, %p629_p11 }
 0x111   : > { %p632_p8 = pnand %p631_p6, %p625_p1 }
 0x113   : > { %635 = shalt.err (!%p632_p8)
}
 0x114   : > { %s708_s17 = smov 256   ;;  %s709_s19 = smov 512  }
 0x115   : > { %s710_s3 = smov 16  }
 0x116   : > { %458 = dma.vmem_to_hbm [thread:$0]  (%p827_p13), %s895_s21, 768, %s900_s26, %s316_s12, %s708_s17, %s709_s19, %s710_s3  }
 0x117 PF: > { %s346_s4 = sand.u32 1, %s674_s9   ;;  %p970_p9 = scmp.ne.s32.totalorder %s959_s20, 0 }
 0x118   : > { %p971_p12 = scmp.ge.s32.totalorder %s694_s14, 2  ;;  %s347_s5 = scalar_lea.sflag [#allocation4], %s346_s4 }
 0x11a   : > { %p469_p0 = pnand %p971_p12, %p970_p9 }
 0x11c   : > { %669 = dma.done.wait (!%p469_p0), %s347_s5, 768  }
 0x11d   : > { %671 = vsyncadd (!%p469_p0), %s347_s5, 4294966528  ;;  %s19_s14 = sadd.s32 1, %s694_s14   ;;  %s972_s9 = smov %s678_s10 }
 0x11e   : > { %p16_p5 = scmp.ge.s32.totalorder %s19_s14, 4   ;;  %s973_s10 = smov %s682_s11 }
 0x11f   : > { %s974_s11 = smov %s835_s28  ;;  %s975_s12 = smov %s690_s13 }
 0x120   : > { %s976_s13 = smov %s978_s25  ;;  %18 = sbr.rel (!%p16_p5) target bundleno = 7 (0x7), region = 81 }
 0x127   :  { %352 = vsyncpa [#allocation3], 1 }
 0x128   :  { %354 = vsyncpa [#allocation3 + $0x1], 1 }
 0x129   :  { %355 = vsyncpa [#allocation6], 1 }
 0x12a   :  { %356 = vsyncpa [#allocation4], 1 }
 0x12b   :  { %358 = vsyncpa [#allocation4 + $0x1], 1 }

</bundles_post_ra>
